<compile_context>
chip_gen: v7x
topology: tpu7x:2x2x1
jax: 0.10.0
libtpu: 0.0.40
codegen_flags: <defaults>
</compile_context>

<pallas_src>
import functools

import jax
import jax.numpy as jnp
from jax import lax
from jax.experimental import pallas as pl
from jax.experimental.pallas import tpu as pltpu


_MAX_TILE_BS = 256   # (256, 64, 64) f32 block = 4 MiB; x2 pipeline buffers = 8 MiB
_GRAM_CHUNK = 32     # batch sub-chunk for the fused Gram (intermediate <= 512 KiB)


def _pointnet_loss_kernel(out_t_ref, lab_ref, m3t_ref, m64_ref,
                          nll_ref, r3_ref, r64_ref,
                          *, bs, tile_bs, chunk, ragged):
    tile0 = pl.program_id(0) * tile_bs            # global batch offset of this tile

    # ---------------- NLL lane partials (batch on the 128-lane axis) ----------
    o = out_t_ref[...]                            # (C, tb) log-probs
    lab = lab_ref[...]                            # (1, tb) int32
    cls_idx = lax.broadcasted_iota(jnp.int32, o.shape, 0)
    onehot = (cls_idx == lab).astype(jnp.float32)
    picked = jnp.sum(o * onehot, axis=0, keepdims=True)     # (1, tb): log p[label]

    # ---------------- 3x3 regularizer, lane-dense -----------------------------
    m3t = m3t_ref[...]                            # (9, tb), row r = i*3 + j
    s3sq = jnp.sum(m3t * m3t, axis=0, keepdims=True)        # (1, tb)  tr(M M^T)

    def row(r):
        return m3t[r:r + 1, :]                    # (1, tb)

    ss3 = jnp.zeros_like(s3sq)                    # sum ||M M^T||_F^2 per lane
    for i in range(3):
        for k in range(i, 3):
            g = (row(3 * i + 0) * row(3 * k + 0)
                 + row(3 * i + 1) * row(3 * k + 1)
                 + row(3 * i + 2) * row(3 * k + 2))          # Gram entry (i,k)
            w = 1.0 if i == k else 2.0                       # Gram symmetry
            ss3 = ss3 + w * (g * g)
    r3 = ss3 - 2.0 * s3sq                                    # (1, tb)

    if ragged:
        lane = lax.broadcasted_iota(jnp.int32, (1, tile_bs), 1)
        valid = (tile0 + lane) < bs
        # where AFTER the per-lane math: drops NaN/garbage from the OOB region.
        picked = jnp.where(valid, picked, 0.0)
        r3 = jnp.where(valid, r3, 0.0)

    nll_ref[0] = picked
    r3_ref[0] = r3

    # ---------------- 64x64 regularizer: fused chunked Gram -------------------
    def gram_contrib(m_c, row_start):
        # m_c: (c, 64, 64) f32
        if ragged:
            ridx = lax.broadcasted_iota(jnp.int32, (m_c.shape[0], 1, 1), 0)
            ok = (tile0 + row_start + ridx) < bs
            m_c = jnp.where(ok, m_c, 0.0)         # zeroed rows contribute exactly 0
        mm = jnp.einsum('bij,bkj->bik', m_c, m_c,
                        preferred_element_type=jnp.float32)  # (c, 64, 64) on MXU
        mm2 = jnp.sum(mm * mm, axis=0)                        # (64, 64)
        msq = jnp.sum(m_c * m_c, axis=0)                      # (64, 64)
        return jnp.sum(mm2 - 2.0 * msq, axis=0, keepdims=True)  # (1, 64) lanes

    n_full = tile_bs // chunk
    rem = tile_bs % chunk
    acc = jnp.zeros((1, 64), jnp.float32)
    if n_full > 0:
        def body(c, a):
            start = pl.multiple_of(c * chunk, chunk)
            m_c = m64_ref[pl.ds(start, chunk), :, :]
            return a + gram_contrib(m_c, start)
        acc = lax.fori_loop(0, n_full, body, acc, unroll=True)
    if rem > 0:
        m_c = m64_ref[pl.ds(n_full * chunk, rem), :, :]
        acc = acc + gram_contrib(m_c, n_full * chunk)
    r64_ref[0] = acc


def pointnet_loss(outputs, labels, m3x3, m64x64, alpha=0.0001):
    bs, n_cls = outputs.shape
    outputs = outputs.astype(jnp.float32)
    m3x3 = m3x3.astype(jnp.float32)
    m64x64 = m64x64.astype(jnp.float32)
    labels = labels.reshape(bs).astype(jnp.int32)

    if bs <= _MAX_TILE_BS:
        tile_bs, num_tiles = bs, 1
    else:
        tile_bs = _MAX_TILE_BS
        num_tiles = pl.cdiv(bs, tile_bs)
    ragged = (bs % tile_bs) != 0                 # only possible when num_tiles > 1
    chunk = min(_GRAM_CHUNK, tile_bs)

    # Lane-dense layouts for the small tensors: batch on the fast 128-lane axis.
    # (These transposes touch only bs*(C+10) floats -- negligible; the dominant
    #  (bs,64,64) tensor is passed through untouched: no wrapper pad / copy.)
    outputs_t = outputs.T                        # (C, bs)
    labels_t = labels.reshape(1, bs)             # (1, bs)
    m3_t = m3x3.reshape(bs, 9).T                 # (9, bs), row = i*3 + j

    kernel = functools.partial(_pointnet_loss_kernel, bs=int(bs),
                               tile_bs=int(tile_bs), chunk=int(chunk),
                               ragged=bool(ragged))

    flops = (2 * bs * 64 * 64 * 64               # 64x64 Gram (MXU)
             + 4 * bs * 64 * 64                  # fused square + reduce passes
             + 60 * bs                           # 3x3 Gram (lane FMAs)
             + 3 * bs * n_cls)                   # NLL one-hot path
    bytes_accessed = 4 * (outputs_t.size + labels_t.size + m3_t.size
                          + m64x64.size + num_tiles * (2 * tile_bs + 64))

    out_shapes = (
        jax.ShapeDtypeStruct((num_tiles, 1, tile_bs), jnp.float32),   # nll lanes
        jax.ShapeDtypeStruct((num_tiles, 1, tile_bs), jnp.float32),   # 3x3 lanes
        jax.ShapeDtypeStruct((num_tiles, 1, 64), jnp.float32),        # 64x64 lanes
    )
    in_specs = [
        pl.BlockSpec((n_cls, tile_bs), lambda i: (0, i)),
        pl.BlockSpec((1, tile_bs), lambda i: (0, i)),
        pl.BlockSpec((9, tile_bs), lambda i: (0, i)),
        pl.BlockSpec((tile_bs, 64, 64), lambda i: (i, 0, 0)),
    ]
    out_specs = (
        pl.BlockSpec((1, 1, tile_bs), lambda i: (i, 0, 0)),
        pl.BlockSpec((1, 1, tile_bs), lambda i: (i, 0, 0)),
        pl.BlockSpec((1, 1, 64), lambda i: (i, 0, 0)),
    )

    nll_part, r3_part, r64_part = pl.pallas_call(
        kernel,
        out_shape=out_shapes,
        grid=(num_tiles,),
        in_specs=in_specs,
        out_specs=out_specs,
        compiler_params=pltpu.CompilerParams(
            dimension_semantics=("parallel",),     # independent tiles -> v7x 2-TC
            vmem_limit_bytes=32 * 1024 * 1024),
        cost_estimate=pl.CostEstimate(flops=flops, transcendentals=0,
                                      bytes_accessed=bytes_accessed),
    )(outputs_t, labels_t, m3_t, m64x64)

    # Final tiny reductions + sqrt + combine: wrapper-side JAX (a few KB).
    bs_f = jnp.float32(bs)
    nll = -jnp.sum(nll_part) / bs_f
    # Clamp: the rearranged identity can round slightly negative near M M^T ~= I.
    n3 = jnp.sqrt(jnp.maximum(jnp.sum(r3_part) + 3.0 * bs_f, 0.0))
    n64 = jnp.sqrt(jnp.maximum(jnp.sum(r64_part) + 64.0 * bs_f, 0.0))
    return nll + jnp.float32(alpha) * (n3 + n64) / bs_f


def _reference_loss(outputs, labels, m3x3, m64x64, alpha=0.0001):
    bs = outputs.shape[0]
    nll = -jnp.mean(outputs[jnp.arange(bs), labels])
    mm3 = jnp.einsum('bij,bkj->bik', m3x3, m3x3)
    mm64 = jnp.einsum('bij,bkj->bik', m64x64, m64x64)
    d3 = jnp.eye(3, dtype=jnp.float32)[None] - mm3
    d64 = jnp.eye(64, dtype=jnp.float32)[None] - mm64
    n3 = jnp.sqrt(jnp.sum(d3 * d3))
    n64 = jnp.sqrt(jnp.sum(d64 * d64))
    return nll + alpha * (n3 + n64) / bs


if __name__ == "__main__":
    def make_inputs(key, bs, num_classes):
        k1, k2, k3, k4 = jax.random.split(key, 4)
        logits = jax.random.normal(k1, (bs, num_classes), dtype=jnp.float32)
        outputs = jax.nn.log_softmax(logits, axis=-1)   # NLLLoss expects log-probs
        labels = jax.random.randint(k2, (bs,), 0, num_classes, dtype=jnp.int32)
        m3x3 = jax.random.normal(k3, (bs, 3, 3), dtype=jnp.float32)
        m64x64 = jax.random.normal(k4, (bs, 64, 64), dtype=jnp.float32) * 0.1
        return outputs, labels, m3x3, m64x64

    # Primary small-shape check (single tile, single chunk).
    bs, num_classes = 2, 10
    outputs, labels, m3x3, m64x64 = make_inputs(jax.random.PRNGKey(0), bs, num_classes)
    loss = jax.block_until_ready(
        pointnet_loss(outputs, labels, m3x3, m64x64, alpha=0.0001))
    ref = _reference_loss(outputs, labels, m3x3, m64x64, alpha=0.0001)
    assert jnp.allclose(loss, ref, atol=1e-4, rtol=1e-4), (loss, ref)

    # Secondary check: multi-tile grid + ragged (non-divisible) batch, no padding.
    bs2 = 300
    outputs2, labels2, m3x3_2, m64x64_2 = make_inputs(jax.random.PRNGKey(1), bs2, num_classes)
    loss2 = jax.block_until_ready(
        pointnet_loss(outputs2, labels2, m3x3_2, m64x64_2, alpha=0.0001))
    ref2 = _reference_loss(outputs2, labels2, m3x3_2, m64x64_2, alpha=0.0001)
    assert jnp.allclose(loss2, ref2, atol=1e-4, rtol=1e-4), (loss2, ref2)

    print("KERNEL_OK")
</pallas_src>

<mosaic_0001>
module attributes {stable_mosaic.version = 11 : i64} {
  func.func @_pointnet_loss_kernel(%arg0: i32, %arg1: memref<10x2xf32, #tpu.memory_space<vmem>>, %arg2: memref<1x2xi32, #tpu.memory_space<vmem>>, %arg3: memref<9x2xf32, #tpu.memory_space<vmem>>, %arg4: memref<2x64x64xf32, #tpu.memory_space<vmem>>, %arg5: memref<1x1x2xf32, #tpu.memory_space<vmem>>, %arg6: memref<1x1x2xf32, #tpu.memory_space<vmem>>, %arg7: memref<1x1x64xf32, #tpu.memory_space<vmem>>) attributes {dimension_semantics = [#tpu.dimension_semantics<parallel>], iteration_bounds = array<i64: 1>, scalar_prefetch = 0 : i64, scratch_operands = 0 : i64, tpu.core_type = #tpu.core_type<tc>, window_params = [{transform_indices = @transform_0, window_bounds = array<i64: 10, 2>}, {transform_indices = @transform_1, window_bounds = array<i64: 1, 2>}, {transform_indices = @transform_2, window_bounds = array<i64: 9, 2>}, {transform_indices = @transform_3, window_bounds = array<i64: 2, 64, 64>}, {transform_indices = @transform_4, window_bounds = array<i64: 1, 1, 2>}, {transform_indices = @transform_5, window_bounds = array<i64: 1, 1, 2>}, {transform_indices = @transform_6, window_bounds = array<i64: 1, 1, 64>}]} {
    %c0 = arith.constant 0 : index
    %c0_0 = arith.constant 0 : index
    %0 = vector.load %arg1[%c0, %c0_0] : memref<10x2xf32, #tpu.memory_space<vmem>>, vector<10x2xf32>
    %c0_1 = arith.constant 0 : index
    %c0_2 = arith.constant 0 : index
    %1 = vector.load %arg2[%c0_1, %c0_2] : memref<1x2xi32, #tpu.memory_space<vmem>>, vector<1x2xi32>
    %2 = tpu.iota {dimensions = array<i32: 0>} : vector<10x2xi32>
    %3 = vector.broadcast %1 : vector<1x2xi32> to vector<10x2xi32>
    %4 = arith.cmpi eq, %2, %3 : vector<10x2xi32>
    %5 = arith.extui %4 : vector<10x2xi1> to vector<10x2xi32>
    %6 = arith.sitofp %5 : vector<10x2xi32> to vector<10x2xf32>
    %7 = arith.mulf %0, %6 : vector<10x2xf32>
    %cst = arith.constant dense<0.000000e+00> : vector<2xf32>
    %8 = vector.multi_reduction <add>, %7, %cst [0] : vector<10x2xf32> to vector<2xf32>
    %9 = vector.shape_cast %8 : vector<2xf32> to vector<1x2xf32>
    %c0_3 = arith.constant 0 : index
    %c0_4 = arith.constant 0 : index
    %10 = vector.load %arg3[%c0_3, %c0_4] : memref<9x2xf32, #tpu.memory_space<vmem>>, vector<9x2xf32>
    %11 = arith.mulf %10, %10 : vector<9x2xf32>
    %cst_5 = arith.constant dense<0.000000e+00> : vector<2xf32>
    %12 = vector.multi_reduction <add>, %11, %cst_5 [0] : vector<9x2xf32> to vector<2xf32>
    %13 = vector.shape_cast %12 : vector<2xf32> to vector<1x2xf32>
    %cst_6 = arith.constant 0.000000e+00 : f32
    %14 = vector.broadcast %cst_6 : f32 to vector<1x2xf32>
    %15 = vector.extract_strided_slice %10 {offsets = [0, 0], sizes = [1, 2], strides = [1, 1]} : vector<9x2xf32> to vector<1x2xf32>
    %16 = vector.extract_strided_slice %10 {offsets = [0, 0], sizes = [1, 2], strides = [1, 1]} : vector<9x2xf32> to vector<1x2xf32>
    %17 = arith.mulf %15, %16 : vector<1x2xf32>
    %18 = vector.extract_strided_slice %10 {offsets = [1, 0], sizes = [1, 2], strides = [1, 1]} : vector<9x2xf32> to vector<1x2xf32>
    %19 = vector.extract_strided_slice %10 {offsets = [1, 0], sizes = [1, 2], strides = [1, 1]} : vector<9x2xf32> to vector<1x2xf32>
    %20 = arith.mulf %18, %19 : vector<1x2xf32>
    %21 = arith.addf %17, %20 : vector<1x2xf32>
    %22 = vector.extract_strided_slice %10 {offsets = [2, 0], sizes = [1, 2], strides = [1, 1]} : vector<9x2xf32> to vector<1x2xf32>
    %23 = vector.extract_strided_slice %10 {offsets = [2, 0], sizes = [1, 2], strides = [1, 1]} : vector<9x2xf32> to vector<1x2xf32>
    %24 = arith.mulf %22, %23 : vector<1x2xf32>
    %25 = arith.addf %21, %24 : vector<1x2xf32>
    %26 = arith.mulf %25, %25 : vector<1x2xf32>
    %cst_7 = arith.constant 1.000000e+00 : f32
    %27 = vector.broadcast %cst_7 : f32 to vector<1x2xf32>
    %28 = arith.mulf %27, %26 : vector<1x2xf32>
    %29 = arith.addf %14, %28 : vector<1x2xf32>
    %30 = vector.extract_strided_slice %10 {offsets = [0, 0], sizes = [1, 2], strides = [1, 1]} : vector<9x2xf32> to vector<1x2xf32>
    %31 = vector.extract_strided_slice %10 {offsets = [3, 0], sizes = [1, 2], strides = [1, 1]} : vector<9x2xf32> to vector<1x2xf32>
    %32 = arith.mulf %30, %31 : vector<1x2xf32>
    %33 = vector.extract_strided_slice %10 {offsets = [1, 0], sizes = [1, 2], strides = [1, 1]} : vector<9x2xf32> to vector<1x2xf32>
    %34 = vector.extract_strided_slice %10 {offsets = [4, 0], sizes = [1, 2], strides = [1, 1]} : vector<9x2xf32> to vector<1x2xf32>
    %35 = arith.mulf %33, %34 : vector<1x2xf32>
    %36 = arith.addf %32, %35 : vector<1x2xf32>
    %37 = vector.extract_strided_slice %10 {offsets = [2, 0], sizes = [1, 2], strides = [1, 1]} : vector<9x2xf32> to vector<1x2xf32>
    %38 = vector.extract_strided_slice %10 {offsets = [5, 0], sizes = [1, 2], strides = [1, 1]} : vector<9x2xf32> to vector<1x2xf32>
    %39 = arith.mulf %37, %38 : vector<1x2xf32>
    %40 = arith.addf %36, %39 : vector<1x2xf32>
    %41 = arith.mulf %40, %40 : vector<1x2xf32>
    %cst_8 = arith.constant 2.000000e+00 : f32
    %42 = vector.broadcast %cst_8 : f32 to vector<1x2xf32>
    %43 = arith.mulf %42, %41 : vector<1x2xf32>
    %44 = arith.addf %29, %43 : vector<1x2xf32>
    %45 = vector.extract_strided_slice %10 {offsets = [0, 0], sizes = [1, 2], strides = [1, 1]} : vector<9x2xf32> to vector<1x2xf32>
    %46 = vector.extract_strided_slice %10 {offsets = [6, 0], sizes = [1, 2], strides = [1, 1]} : vector<9x2xf32> to vector<1x2xf32>
    %47 = arith.mulf %45, %46 : vector<1x2xf32>
    %48 = vector.extract_strided_slice %10 {offsets = [1, 0], sizes = [1, 2], strides = [1, 1]} : vector<9x2xf32> to vector<1x2xf32>
    %49 = vector.extract_strided_slice %10 {offsets = [7, 0], sizes = [1, 2], strides = [1, 1]} : vector<9x2xf32> to vector<1x2xf32>
    %50 = arith.mulf %48, %49 : vector<1x2xf32>
    %51 = arith.addf %47, %50 : vector<1x2xf32>
    %52 = vector.extract_strided_slice %10 {offsets = [2, 0], sizes = [1, 2], strides = [1, 1]} : vector<9x2xf32> to vector<1x2xf32>
    %53 = vector.extract_strided_slice %10 {offsets = [8, 0], sizes = [1, 2], strides = [1, 1]} : vector<9x2xf32> to vector<1x2xf32>
    %54 = arith.mulf %52, %53 : vector<1x2xf32>
    %55 = arith.addf %51, %54 : vector<1x2xf32>
    %56 = arith.mulf %55, %55 : vector<1x2xf32>
    %cst_9 = arith.constant 2.000000e+00 : f32
    %57 = vector.broadcast %cst_9 : f32 to vector<1x2xf32>
    %58 = arith.mulf %57, %56 : vector<1x2xf32>
    %59 = arith.addf %44, %58 : vector<1x2xf32>
    %60 = vector.extract_strided_slice %10 {offsets = [3, 0], sizes = [1, 2], strides = [1, 1]} : vector<9x2xf32> to vector<1x2xf32>
    %61 = vector.extract_strided_slice %10 {offsets = [3, 0], sizes = [1, 2], strides = [1, 1]} : vector<9x2xf32> to vector<1x2xf32>
    %62 = arith.mulf %60, %61 : vector<1x2xf32>
    %63 = vector.extract_strided_slice %10 {offsets = [4, 0], sizes = [1, 2], strides = [1, 1]} : vector<9x2xf32> to vector<1x2xf32>
    %64 = vector.extract_strided_slice %10 {offsets = [4, 0], sizes = [1, 2], strides = [1, 1]} : vector<9x2xf32> to vector<1x2xf32>
    %65 = arith.mulf %63, %64 : vector<1x2xf32>
    %66 = arith.addf %62, %65 : vector<1x2xf32>
    %67 = vector.extract_strided_slice %10 {offsets = [5, 0], sizes = [1, 2], strides = [1, 1]} : vector<9x2xf32> to vector<1x2xf32>
    %68 = vector.extract_strided_slice %10 {offsets = [5, 0], sizes = [1, 2], strides = [1, 1]} : vector<9x2xf32> to vector<1x2xf32>
    %69 = arith.mulf %67, %68 : vector<1x2xf32>
    %70 = arith.addf %66, %69 : vector<1x2xf32>
    %71 = arith.mulf %70, %70 : vector<1x2xf32>
    %cst_10 = arith.constant 1.000000e+00 : f32
    %72 = vector.broadcast %cst_10 : f32 to vector<1x2xf32>
    %73 = arith.mulf %72, %71 : vector<1x2xf32>
    %74 = arith.addf %59, %73 : vector<1x2xf32>
    %75 = vector.extract_strided_slice %10 {offsets = [3, 0], sizes = [1, 2], strides = [1, 1]} : vector<9x2xf32> to vector<1x2xf32>
    %76 = vector.extract_strided_slice %10 {offsets = [6, 0], sizes = [1, 2], strides = [1, 1]} : vector<9x2xf32> to vector<1x2xf32>
    %77 = arith.mulf %75, %76 : vector<1x2xf32>
    %78 = vector.extract_strided_slice %10 {offsets = [4, 0], sizes = [1, 2], strides = [1, 1]} : vector<9x2xf32> to vector<1x2xf32>
    %79 = vector.extract_strided_slice %10 {offsets = [7, 0], sizes = [1, 2], strides = [1, 1]} : vector<9x2xf32> to vector<1x2xf32>
    %80 = arith.mulf %78, %79 : vector<1x2xf32>
    %81 = arith.addf %77, %80 : vector<1x2xf32>
    %82 = vector.extract_strided_slice %10 {offsets = [5, 0], sizes = [1, 2], strides = [1, 1]} : vector<9x2xf32> to vector<1x2xf32>
    %83 = vector.extract_strided_slice %10 {offsets = [8, 0], sizes = [1, 2], strides = [1, 1]} : vector<9x2xf32> to vector<1x2xf32>
    %84 = arith.mulf %82, %83 : vector<1x2xf32>
    %85 = arith.addf %81, %84 : vector<1x2xf32>
    %86 = arith.mulf %85, %85 : vector<1x2xf32>
    %cst_11 = arith.constant 2.000000e+00 : f32
    %87 = vector.broadcast %cst_11 : f32 to vector<1x2xf32>
    %88 = arith.mulf %87, %86 : vector<1x2xf32>
    %89 = arith.addf %74, %88 : vector<1x2xf32>
    %90 = vector.extract_strided_slice %10 {offsets = [6, 0], sizes = [1, 2], strides = [1, 1]} : vector<9x2xf32> to vector<1x2xf32>
    %91 = vector.extract_strided_slice %10 {offsets = [6, 0], sizes = [1, 2], strides = [1, 1]} : vector<9x2xf32> to vector<1x2xf32>
    %92 = arith.mulf %90, %91 : vector<1x2xf32>
    %93 = vector.extract_strided_slice %10 {offsets = [7, 0], sizes = [1, 2], strides = [1, 1]} : vector<9x2xf32> to vector<1x2xf32>
    %94 = vector.extract_strided_slice %10 {offsets = [7, 0], sizes = [1, 2], strides = [1, 1]} : vector<9x2xf32> to vector<1x2xf32>
    %95 = arith.mulf %93, %94 : vector<1x2xf32>
    %96 = arith.addf %92, %95 : vector<1x2xf32>
    %97 = vector.extract_strided_slice %10 {offsets = [8, 0], sizes = [1, 2], strides = [1, 1]} : vector<9x2xf32> to vector<1x2xf32>
    %98 = vector.extract_strided_slice %10 {offsets = [8, 0], sizes = [1, 2], strides = [1, 1]} : vector<9x2xf32> to vector<1x2xf32>
    %99 = arith.mulf %97, %98 : vector<1x2xf32>
    %100 = arith.addf %96, %99 : vector<1x2xf32>
    %101 = arith.mulf %100, %100 : vector<1x2xf32>
    %cst_12 = arith.constant 1.000000e+00 : f32
    %102 = vector.broadcast %cst_12 : f32 to vector<1x2xf32>
    %103 = arith.mulf %102, %101 : vector<1x2xf32>
    %104 = arith.addf %89, %103 : vector<1x2xf32>
    %cst_13 = arith.constant 2.000000e+00 : f32
    %105 = vector.broadcast %cst_13 : f32 to vector<1x2xf32>
    %106 = arith.mulf %105, %13 : vector<1x2xf32>
    %107 = arith.subf %104, %106 : vector<1x2xf32>
    %c0_14 = arith.constant 0 : index
    %c0_15 = arith.constant 0 : index
    %c0_16 = arith.constant 0 : index
    %108 = vector.load %arg5[%c0_14, %c0_15, %c0_16] : memref<1x1x2xf32, #tpu.memory_space<vmem>>, vector<1x1x2xf32>
    %109 = vector.shape_cast %108 : vector<1x1x2xf32> to vector<1x2xf32>
    %110 = vector.shape_cast %9 : vector<1x2xf32> to vector<1x1x2xf32>
    tpu.vector_store %arg5[%c0_14, %c0_15, %c0_16], %110 {strides = array<i32>} : memref<1x1x2xf32, #tpu.memory_space<vmem>>, vector<1x1x2xf32>,
    %c0_17 = arith.constant 0 : index
    %c0_18 = arith.constant 0 : index
    %c0_19 = arith.constant 0 : index
    %111 = vector.load %arg6[%c0_17, %c0_18, %c0_19] : memref<1x1x2xf32, #tpu.memory_space<vmem>>, vector<1x1x2xf32>
    %112 = vector.shape_cast %111 : vector<1x1x2xf32> to vector<1x2xf32>
    %113 = vector.shape_cast %107 : vector<1x2xf32> to vector<1x1x2xf32>
    tpu.vector_store %arg6[%c0_17, %c0_18, %c0_19], %113 {strides = array<i32>} : memref<1x1x2xf32, #tpu.memory_space<vmem>>, vector<1x1x2xf32>,
    %cst_20 = arith.constant 0.000000e+00 : f32
    %114 = vector.broadcast %cst_20 : f32 to vector<1x64xf32>
    %c0_i32 = arith.constant 0 : i32
    %c2_i32 = arith.constant 2 : i32
    %115 = arith.muli %c0_i32, %c2_i32 : i32
    %116 = tpu.assume_multiple %115, 2 : i32
    %117 = arith.index_cast %116 : i32 to index
    %c0_21 = arith.constant 0 : index
    %c0_22 = arith.constant 0 : index
    %118 = vector.load %arg4[%117, %c0_21, %c0_22] : memref<2x64x64xf32, #tpu.memory_space<vmem>>, vector<2x64x64xf32>
    "tpu.trace_start"() <{level = 10 : i32, message = "bij,bkj->bik"}> : () -> ()
    %cst_23 = arith.constant dense<0.000000e+00> : vector<2x64x64xf32>
    %119 = tpu.matmul %118, %118, %cst_23 {dimension_numbers = #tpu.dot_dimension_numbers<[2], [2], [1], [1], [0, 0, 0, 1, 1, 1], [0], [0]>} : vector<2x64x64xf32>, vector<2x64x64xf32>, vector<2x64x64xf32> -> vector<2x64x64xf32>
    "tpu.trace_stop"() : () -> ()
    %120 = arith.mulf %119, %119 : vector<2x64x64xf32>
    %cst_24 = arith.constant dense<0.000000e+00> : vector<64x64xf32>
    %121 = vector.multi_reduction <add>, %120, %cst_24 [0] : vector<2x64x64xf32> to vector<64x64xf32>
    %122 = arith.mulf %118, %118 : vector<2x64x64xf32>
    %cst_25 = arith.constant dense<0.000000e+00> : vector<64x64xf32>
    %123 = vector.multi_reduction <add>, %122, %cst_25 [0] : vector<2x64x64xf32> to vector<64x64xf32>
    %cst_26 = arith.constant 2.000000e+00 : f32
    %124 = vector.broadcast %cst_26 : f32 to vector<64x64xf32>
    %125 = arith.mulf %124, %123 : vector<64x64xf32>
    %126 = arith.subf %121, %125 : vector<64x64xf32>
    %cst_27 = arith.constant dense<0.000000e+00> : vector<64xf32>
    %127 = vector.multi_reduction <add>, %126, %cst_27 [0] : vector<64x64xf32> to vector<64xf32>
    %128 = vector.shape_cast %127 : vector<64xf32> to vector<1x64xf32>
    %129 = arith.addf %114, %128 : vector<1x64xf32>
    %c1_i32 = arith.constant 1 : i32
    %c0_28 = arith.constant 0 : index
    %c0_29 = arith.constant 0 : index
    %c0_30 = arith.constant 0 : index
    %130 = vector.load %arg7[%c0_28, %c0_29, %c0_30] : memref<1x1x64xf32, #tpu.memory_space<vmem>>, vector<1x1x64xf32>
    %131 = vector.shape_cast %130 : vector<1x1x64xf32> to vector<1x64xf32>
    %132 = vector.shape_cast %129 : vector<1x64xf32> to vector<1x1x64xf32>
    tpu.vector_store %arg7[%c0_28, %c0_29, %c0_30], %132 {strides = array<i32>} : memref<1x1x64xf32, #tpu.memory_space<vmem>>, vector<1x1x64xf32>,
    return
  }
  func.func @transform_0(%arg0: i32) -> (i32, i32) {
    %c0_i32 = arith.constant 0 : i32
    %c0_i32_0 = arith.constant 0 : i32
    return %c0_i32, %arg0 : i32, i32
  }
  func.func @transform_1(%arg0: i32) -> (i32, i32) {
    %c0_i32 = arith.constant 0 : i32
    %c0_i32_0 = arith.constant 0 : i32
    return %c0_i32, %arg0 : i32, i32
  }
  func.func @transform_2(%arg0: i32) -> (i32, i32) {
    %c0_i32 = arith.constant 0 : i32
    %c0_i32_0 = arith.constant 0 : i32
    return %c0_i32, %arg0 : i32, i32
  }
  func.func @transform_3(%arg0: i32) -> (i32, i32, i32) {
    %c0_i32 = arith.constant 0 : i32
    %c0_i32_0 = arith.constant 0 : i32
    %c0_i32_1 = arith.constant 0 : i32
    return %arg0, %c0_i32, %c0_i32_0 : i32, i32, i32
  }
  func.func @transform_4(%arg0: i32) -> (i32, i32, i32) {
    %c0_i32 = arith.constant 0 : i32
    %c0_i32_0 = arith.constant 0 : i32
    %c0_i32_1 = arith.constant 0 : i32
    return %arg0, %c0_i32, %c0_i32_0 : i32, i32, i32
  }
  func.func @transform_5(%arg0: i32) -> (i32, i32, i32) {
    %c0_i32 = arith.constant 0 : i32
    %c0_i32_0 = arith.constant 0 : i32
    %c0_i32_1 = arith.constant 0 : i32
    return %arg0, %c0_i32, %c0_i32_0 : i32, i32, i32
  }
  func.func @transform_6(%arg0: i32) -> (i32, i32, i32) {
    %c0_i32 = arith.constant 0 : i32
    %c0_i32_0 = arith.constant 0 : i32
    %c0_i32_1 = arith.constant 0 : i32
    return %arg0, %c0_i32, %c0_i32_0 : i32, i32, i32
  }
}

</mosaic_0001>

<bundles_post_ra>
// kernel: tpu_custom_call.1
= control target key start
LH: loop header
LB: loop body
LE: loop exit
PB: predicated region body
PF: predicated region fallthrough
CT: control target
= control target key end

     0   :  { %12 = vsyncpa [#allocation3], 0  ;;  %s1149_s0 = inlined_call_operand.vmem [shape: f32[10,2], index: 0, kind: input, shape index: {}]   ;;  %s1150_s1 = inlined_call_operand.vmem [shape: s32[1,2], index: 1, kind: input, shape index: {}]   ;;  %s1151_s2 = inlined_call_operand.vmem [shape: f32[9,2], index: 2, kind: input, shape index: {}]   ;;  %s1152_s3 = inlined_call_operand.hbm [shape: f32[2,64,64], index: 3, kind: input, shape index: {}]   ;;  %s1153_s4 = inlined_call_operand.hbm [shape: f32[1,1,2], index: 4, kind: output, shape index: {0}]   ;;  %s1154_s5 = inlined_call_operand.hbm [shape: f32[1,1,2], index: 5, kind: output, shape index: {1}]   ;;  %s1155_s6 = inlined_call_operand.hbm [shape: f32[1,1,64], index: 6, kind: output, shape index: {2}]  }
   0x1   :  { %13 = vsyncpa [#allocation4], 0 }
   0x2   :  { %14 = vsyncpa [#allocation7], 0  ;;  %s861_s21 = smov [#allocation2]   ;;  %s767_s25 = scalar_lea.hbm %s1152_s3, 2048 }
   0x3   :  { %s26_s22 = sshll.u32 %s861_s21, 4  ;;  %p768_p0 = scmp.ne.s32.totalorder %s1152_s3, %s767_s25  ;;  %s27_s22 = int_to_ptr.vmem [resolvable:$true] %s26_s22 }
   0x4   :  { %p771_p1 = scmp.lt.u32.totalorder %s767_s25, %s1152_s3 }
   0x6   :  { %p773_p2 = pnand %p771_p1, %p768_p0 }
   0x8   :  { %776 = shalt.err (!%p773_p2)
}
   0x9   :  { %s777_s30 = scalar_lea.vmem %s27_s22, 2048  ;;  %p782_p4 = scmp.lt.s32.totalorder %s27_s22, %s27_s22 }
   0xa   :  { %p778_p3 = scmp.ne.s32.totalorder %s27_s22, %s777_s30  ;;  %p783_p5 = scmp.lt.s32.totalorder %s777_s30, %s777_s30 }
   0xc   :  { %p784_p6 = por %p783_p5, %p782_p4 }
   0xe   :  { %p785_p7 = pnand %p784_p6, %p778_p3 }
  0x10   :  { %788 = shalt.err (!%p785_p7)
}
  0x11   :  { %s862_s7 = smov 128   ;;  %s863_s8 = smov 8  }
  0x12   :  { %32 = dma.hbm_to_vmem [thread:$0]  %s1152_s3, 2048, %s27_s22, [#allocation3], %s862_s7, %s862_s7, %s863_s8  }
  0x13   :  { %855 = dma.done.wait [#allocation3], 2048  }
  0x14   :  { %856 = vsyncadd [#allocation3], 4294965248  ;;  %vm168_vm0 = vcmask 523264   ;;  %v152_v1 = vld [vmem:[#allocation2] sm:$0xff]  ;;  %v153_v2 = vld [vmem:[#allocation2 + $0x8] sm:$0xff]  ;;  %v39_v37 = vlaneseq  ;;  %vm54_vm2 = vcmask 15360  }
  0x15   :  { %vm917_vm1 = vmpackc.low %vm168_vm0, %vm168_vm0  ;;  %v160_v3 = vld [vmem:[#allocation2 + $0x40] sm:$0xff]  ;;  %v712_v4 = vpack.c.bf16 %v153_v2, %v152_v1  ;;  %v161_v5 = vld [vmem:[#allocation2 + $0x48] sm:$0xff]  ;;  %672 = vmatprep.mubr.msk.f32.mxu0 %vm168_vm0, %v152_v1  ;;  %v468_v25 = vmul.f32 %v153_v2, %v153_v2  ;;  %v467_v27 = vmul.f32 %v152_v1, %v152_v1  ;;  %vm70_vm3 = vcmask 8192  }
  0x16   :  { %v921_v6 = vld [vmem:[#allocation2 + $0x10] sm:$0xff]  ;;  %v923_v7 = vld [vmem:[#allocation2 + $0x18] sm:$0xff]  ;;  %v736_v8 = vpack.c.bf16 %v161_v5, %v160_v3  ;;  %700 = vmatprep.mubr.msk.f32.mxu1 %vm168_vm0, %v160_v3  ;;  %v947_v13 = vld [vmem:[#allocation2 + $0x20] sm:$0xff]  ;;  %v476_v26 = vmul.f32 %v161_v5, %v161_v5  ;;  %v475_v28 = vmul.f32 %v160_v3, %v160_v3  ;;  %v40_v40 = vshrl.u32 %v39_v37, 7 }
  0x17   :  { %v718_v9 = vpack.c.bf16 %v923_v7, %v921_v6  ;;  %v928_v10 = vld [vmem:[#allocation2 + $0x50] sm:$0xff]  ;;  %v930_v11 = vld [vmem:[#allocation2 + $0x58] sm:$0xff]  ;;  %714 = vmatprep.subr.msk.bf16.mxu0 %vm917_vm1, %v712_v4  ;;  %v949_v14 = vld [vmem:[#allocation2 + $0x28] sm:$0xff]  ;;  %v486_v29 = vsel %vm168_vm0, %v468_v25, 0.0  ;;  %v483_v31 = vsel %vm168_vm0, %v467_v27, 0.0  ;;  %v864_v55 = vmov 0.0  }
  0x18   :  { %v742_v12 = vpack.c.bf16 %v930_v11, %v928_v10  ;;  %738 = vmatprep.subr.msk.bf16.mxu1 %vm917_vm1, %v736_v8  ;;  %717 = vmatpush3.bf16.xpose.msk.msra.mxu0 %vm917_vm1, %v712_v4  ;;  %v951_v15 = vld [vmem:[#allocation2 + $0x60] sm:$0xff]  ;;  %v953_v16 = vld [vmem:[#allocation2 + $0x68] sm:$0xff]  ;;  %v724_v17 = vpack.c.bf16 %v949_v14, %v947_v13  ;;  %v967_v19 = vld [vmem:[#allocation2 + $0x30] sm:$0xff]  ;;  %v487_v30 = vsel %vm168_vm0, %v476_v26, 0.0  ;;  %v484_v32 = vsel %vm168_vm0, %v475_v28, 0.0 }
  0x19   :  { %741 = vmatpush3.bf16.xpose.msk.msra.mxu1 %vm917_vm1, %v736_v8  ;;  %720 = vmatprep.subr.msk.bf16.mxu0 %vm917_vm1, %v718_v9  ;;  %v748_v18 = vpack.c.bf16 %v953_v16, %v951_v15  ;;  %v969_v20 = vld [vmem:[#allocation2 + $0x38] sm:$0xff]  ;;  %v971_v21 = vld [vmem:[#allocation2 + $0x70] sm:$0xff]  ;;  %v1021_v33 = vadd.f32 %v487_v30, %v486_v29  ;;  %v1023_v34 = vadd.f32 %v484_v32, %v483_v31  ;;  %v41_v45 = vadd.s32 8, %v40_v40 }
  0x1a   :  { %744 = vmatprep.subr.msk.bf16.mxu1 %vm917_vm1, %v742_v12  ;;  %v973_v22 = vld [vmem:[#allocation2 + $0x78] sm:$0xff]  ;;  %v730_v23 = vpack.c.bf16 %v969_v20, %v967_v19  ;;  %v65_v35 = vld [vmem:[%s1151_s2] sm:$0xff]  ;;  %vm56_vm6 = vcmask 9216  }
  0x1b   :  { %v754_v24 = vpack.c.bf16 %v973_v22, %v971_v21  ;;  %v89_v36 = vrot.slane %v65_v35, 3  ;;  %v66_v38 = vld [vmem:[%s1151_s2 + $0x8] sm:$0x1]  ;;  %v67_v41 = vmul.f32 %v65_v35, %v65_v35  ;;  %v102_v44 = vrot.slane %v65_v35, 6  ;;  %v589_v47 = vld [vmem:[%s1150_s1] ss:$0 sm:$0xff] }
  0x1c   :  { %v68_v42 = vmul.f32 %v66_v38, %v66_v38  ;;  %v110_v46 = vrot.slane %v66_v38, 6  ;;  %vm46_vm4 = vcmp.eq.s32.totalorder %v40_v40, %v589_v47  ;;  %vm47_vm5 = vcmp.eq.s32.totalorder %v41_v45, %v589_v47  ;;  %v36_v53 = vld [vmem:[%s1149_s0] sm:$0xff]  ;;  %v37_v54 = vld [vmem:[%s1149_s0 + $0x8] sm:$0x3]  ;;  %s865_s0 = smov [#allocation5]  }
  0x1d   :  { %v91_v39 = vmul.f32 %v89_v36, %v65_v35  ;;  %v69_v48 = vsel %vm54_vm2, %v67_v41, 0.0  ;;  %v80_v50 = vrot.slane %v67_v41, 1  ;;  %v590_v56 = vsel %vm46_vm4, 1.0, %v864_v55  ;;  %s553_s1 = sshll.u32 %s865_s0, 4  ;;  %s554_s1 = int_to_ptr.vmem [resolvable:$true] %s553_s1 }
  0x1e   :  { %v71_v49 = vsel %vm70_vm3, %v68_v42, 0.0  ;;  %v591_v57 = vsel %vm47_vm5, 1.0, %v864_v55  ;;  %v83_v59 = vrot.slane %v67_v41, 2  ;;  %v52_v60 = vmul.f32 %v590_v56, %v36_v53  ;;  %s789_s19 = scalar_lea.vmem %s554_s1, 16  ;;  %s793_s20 = scalar_lea.vmem %s554_s1, 32 }
  0x1f   :  { %v93_v43 = vrot.slane %v91_v39, 1  ;;  %v72_v52 = vadd.f32 %v71_v49, %v69_v48  ;;  %v82_v58 = vadd.f32 %v80_v50, %v67_v41  ;;  %v53_v61 = vmul.f32 %v591_v57, %v37_v54  ;;  %p790_p8 = scmp.ne.s32.totalorder %s554_s1, %s789_s19  ;;  %p794_p9 = scmp.lt.s32.totalorder %s554_s1, %s554_s1 }
  0x20   :  { %723 = vmatpush3.bf16.xpose.msk.msra.mxu0 %vm917_vm1, %v718_v9  ;;  %v96_v63 = vrot.slane %v91_v39, 2  ;;  %v104_v1 = vmul.f32 %v102_v44, %v65_v35  ;;  %v55_v3 = vsel %vm54_vm2, %v52_v60, 0.0  ;;  %v138_v25 = vrot.slane %v68_v42, 2  ;;  %p795_p10 = scmp.lt.s32.totalorder %s793_s20, %s789_s19 }
  0x21   :  { %747 = vmatpush3.bf16.xpose.msk.msra.mxu1 %vm917_vm1, %v742_v12  ;;  %726 = vmatprep.subr.msk.bf16.mxu0 %vm917_vm1, %v724_v17  ;;  %v95_v51 = vadd.f32 %v93_v43, %v91_v39  ;;  %v73_v62 = vrot.slane %v72_v52, 4  ;;  %v85_v0 = vadd.f32 %v83_v59, %v82_v58  ;;  %v57_v4 = vsel %vm56_vm6, %v53_v61, 0.0 }
  0x22   :  { %750 = vmatprep.subr.msk.bf16.mxu1 %vm917_vm1, %v748_v18  ;;  %v58_v9 = vadd.f32 %v57_v4, %v55_v3  ;;  %v106_v12 = vrot.slane %v104_v1, 1  ;;  %v140_v39 = vadd.f32 %v138_v25, %v82_v58  ;;  %p796_p11 = por %p795_p10, %p794_p9 }
  0x23   :  { %v98_v8 = vadd.f32 %v96_v63, %v95_v51  ;;  %v86_v26 = vmul.f32 %v85_v0, %v85_v0 }
  0x24   :  { %v108_v27 = vadd.f32 %v106_v12, %v104_v1  ;;  %v59_v28 = vrot.slane %v58_v9, 4  ;;  %v141_v42 = vmul.f32 %v140_v39, %v140_v39  ;;  %p797_p12 = pnand %p796_p11, %p790_p8 }
  0x25   :  { %v121_v47 = vrot.slane %v86_v26, 3 }
  0x26   :  { %v60_v36 = vadd.f32 %v59_v28, %v58_v9  ;;  %v143_v56 = vrot.slane %v141_v42, 6 }
  0x28   :  { %729 = vmatpush3.bf16.xpose.msk.msra.mxu0 %vm917_vm1, %v724_v17  ;;  %v61_v43 = vrot.slane %v60_v36, 2 }
  0x29   :  { %753 = vmatpush3.bf16.xpose.msk.msra.mxu1 %vm917_vm1, %v748_v18  ;;  %732 = vmatprep.subr.msk.bf16.mxu0 %vm917_vm1, %v730_v23 }
  0x2a   :  { %756 = vmatprep.subr.msk.bf16.mxu1 %vm917_vm1, %v754_v24  ;;  %v62_v48 = vadd.f32 %v61_v43, %v60_v36 }
  0x2c   :  { %v63_v50 = vrot.slane %v62_v48, 1 }
  0x2e   :  { %v64_v54 = vadd.f32 %v63_v50, %v62_v48 }
  0x30   :  { %735 = vmatpush3.bf16.xpose.msk.msra.mxu0 %vm917_vm1, %v730_v23  ;;  %v99_v23 = vmul.f32 %v98_v8, %v98_v8  ;;  %148 = vst.msk [vmem:[#allocation5] sm:$0x1] %vm70_vm3, %v64_v54 }
  0x31   :  { %759 = vmatpush3.bf16.xpose.msk.msra.mxu1 %vm917_vm1, %v754_v24  ;;  %v124_v24 = vrot.slane %v66_v38, 3 }
  0x32   :  { %v100_v30 = vmul.f32 2.0, %v99_v23 }
  0x33   :  { %v126_v31 = vmul.f32 %v124_v24, %v65_v35 }
  0x34   :  { %v101_v40 = vadd.f32 %v100_v30, %v86_v26 }
  0x35   :  { %v128_v37 = vrot.slane %v126_v31, 2 }
  0x37   :  { %673 = vmatmul.mubr.msk.f32.vlgmr.msra.gmra.mrb[0].mxu0 %vm168_vm0, %v153_v2  ;;  %v112_v2 = vmul.f32 %v110_v46, %v65_v35  ;;  %v130_v45 = vadd.f32 %v128_v37, %v95_v51 }
  0x38   :  { %701 = vmatmul.mubr.msk.f32.vlgmr.msra.gmra.mrb[0].mxu1 %vm168_vm0, %v161_v5  ;;  %675 = vmatprep.mubr.msk.f32.mxu0 %vm168_vm0, %v921_v6  ;;  %v74_v5 = vadd.f32 %v73_v62, %v72_v52 }
  0x39   :  { %703 = vmatprep.mubr.msk.f32.mxu1 %vm168_vm0, %v928_v10  ;;  %v114_v17 = vrot.slane %v112_v2, 2  ;;  %v131_v38 = vmul.f32 %v130_v45, %v130_v45 }
  0x3a   :  { %v75_v18 = vrot.slane %v74_v5, 2 }
  0x3b   :  { %676 = vmatmul.mubr.msk.f32.gmra.mrb[2].mxu0 %vm168_vm0, %v923_v7  ;;  %v116_v32 = vadd.f32 %v114_v17, %v108_v27  ;;  %v132_v35 = vmul.f32 2.0, %v131_v38 }
  0x3c   :  { %704 = vmatmul.mubr.msk.f32.gmra.mrb[2].mxu1 %vm168_vm0, %v930_v11  ;;  %678 = vmatprep.mubr.msk.f32.mxu0 %vm168_vm0, %v947_v13  ;;  %v76_v29 = vadd.f32 %v75_v18, %v74_v5 }
  0x3d   :  { %706 = vmatprep.mubr.msk.f32.mxu1 %vm168_vm0, %v951_v15  ;;  %v117_v41 = vmul.f32 %v116_v32, %v116_v32  ;;  %v134_v55 = vrot.slane %v132_v35, 3 }
  0x3e   :  { %v77_v44 = vrot.slane %v76_v29, 1 }
  0x3f   :  { %679 = vmatmul.mubr.msk.f32.gmra.mrb[4].mxu0 %vm168_vm0, %v949_v14  ;;  %v118_v46 = vmul.f32 2.0, %v117_v41 }
  0x40   :  { %707 = vmatmul.mubr.msk.f32.gmra.mrb[4].mxu1 %vm168_vm0, %v953_v16  ;;  %681 = vmatprep.mubr.msk.f32.mxu0 %vm168_vm0, %v967_v19  ;;  %v78_v52 = vadd.f32 %v77_v44, %v76_v29 }
  0x41   :  { %709 = vmatprep.mubr.msk.f32.mxu1 %vm168_vm0, %v971_v21  ;;  %v119_v49 = vadd.f32 %v118_v46, %v101_v40 }
  0x42   :  { %v146_v51 = vmul.f32 2.0, %v78_v52 }
  0x43   :  { %682 = vmatmul.mubr.msk.f32.gmra.mrb[6].mxu0 %vm168_vm0, %v969_v20  ;;  %v123_v53 = vadd.f32 %v121_v47, %v119_v49 }
  0x44   :  { %710 = vmatmul.mubr.msk.f32.gmra.mrb[6].mxu1 %vm168_vm0, %v973_v22 }
  0x45   :  { %v136_v57 = vadd.f32 %v134_v55, %v123_v53 }
  0x46   :  { %800 = shalt.err (!%p797_p12)
}
  0x47   :  { %s801_s23 = scalar_lea.hbm %s1153_s4, 16 }
  0x48   :  { %p802_p13 = scmp.ne.s32.totalorder %s1153_s4, %s801_s23  ;;  %p805_p0 = scmp.lt.u32.totalorder %s801_s23, %s1153_s4 }
  0x4a   :  { %p807_p1 = pnand %p805_p0, %p802_p13 }
  0x4c   :  { %810 = shalt.err (!%p807_p1)
}
  0x4d   :  { %556 = dma.vmem_to_hbm [thread:$0]  %s554_s1, 16, %s1153_s4, [#allocation4]   ;;  %v145_v58 = vadd.f32 %v143_v56, %v136_v57 }
  0x4e   :  { %s866_s30 = smov [#allocation6]  }
  0x4f   :  { %s563_s7 = sshll.u32 %s866_s30, 4  ;;  %v147_v59 = vsub.f32 %v145_v58, %v146_v51  ;;  %s564_s7 = int_to_ptr.vmem [resolvable:$true] %s563_s7 }
  0x50   :  { %s811_s8 = scalar_lea.vmem %s564_s7, 16  ;;  %s815_s9 = scalar_lea.vmem %s564_s7, 32 }
  0x51   :  { %149 = vst.msk [vmem:[#allocation6] sm:$0x1] %vm70_vm3, %v147_v59  ;;  %p812_p2 = scmp.ne.s32.totalorder %s564_s7, %s811_s8  ;;  %p816_p3 = scmp.lt.s32.totalorder %s564_s7, %s564_s7 }
  0x52   :  { %p817_p4 = scmp.lt.s32.totalorder %s815_s9, %s811_s8 }
  0x54   :  { %p818_p5 = por %p817_p4, %p816_p3 }
  0x56   :  { %p819_p6 = pnand %p818_p5, %p812_p2 }
  0x58   :  { %822 = shalt.err (!%p819_p6)
}
  0x59   :  { %s823_s11 = scalar_lea.hbm %s1154_s5, 16 }
  0x5a   :  { %p824_p7 = scmp.ne.s32.totalorder %s1154_s5, %s823_s11  ;;  %p827_p8 = scmp.lt.u32.totalorder %s823_s11, %s1154_s5 }
  0x5c   :  { %p829_p9 = pnand %p827_p8, %p824_p7 }
  0x5e   :  { %832 = shalt.err (!%p829_p9)
}
  0x5f   :  { %566 = dma.vmem_to_hbm [thread:$0]  %s564_s7, 16, %s1154_s5, [#allocation7]   ;;  %v470_v60 = vmul.f32 %v923_v7, %v923_v7  ;;  %v478_v61 = vmul.f32 %v930_v11, %v930_v11  ;;  %v469_v62 = vmul.f32 %v921_v6, %v921_v6  ;;  %v477_v63 = vmul.f32 %v928_v10, %v928_v10 }
  0x60   :  { %v472_v0 = vmul.f32 %v949_v14, %v949_v14  ;;  %v480_v1 = vmul.f32 %v953_v16, %v953_v16  ;;  %v471_v6 = vmul.f32 %v947_v13, %v947_v13  ;;  %v479_v10 = vmul.f32 %v951_v15, %v951_v15  ;;  %s867_s5 = smov [#allocation8]  }
  0x61   :  { %v492_v2 = vsel %vm168_vm0, %v470_v60, 0.0  ;;  %v493_v3 = vsel %vm168_vm0, %v478_v61, 0.0  ;;  %v489_v7 = vsel %vm168_vm0, %v469_v62, 0.0  ;;  %v490_v11 = vsel %vm168_vm0, %v477_v63, 0.0  ;;  %s573_s16 = sshll.u32 %s867_s5, 4  ;;  %s574_s16 = int_to_ptr.vmem [resolvable:$true] %s573_s16 }
  0x62   :  { %v498_v4 = vsel %vm168_vm0, %v472_v0, 0.0  ;;  %v499_v14 = vsel %vm168_vm0, %v480_v1, 0.0  ;;  %v494_v5 = vadd.f32 %v493_v3, %v492_v2  ;;  %v491_v16 = vadd.f32 %v490_v11, %v489_v7  ;;  %s833_s17 = scalar_lea.vmem %s574_s16, 16  ;;  %s837_s18 = scalar_lea.vmem %s574_s16, 32 }
  0x63   :  { %v500_v8 = vadd.f32 %v499_v14, %v498_v4  ;;  %v495_v9 = vsel %vm168_vm0, %v471_v6, 0.0  ;;  %v496_v12 = vsel %vm168_vm0, %v479_v10, 0.0  ;;  %v474_v17 = vmul.f32 %v969_v20, %v969_v20  ;;  %p834_p10 = scmp.ne.s32.totalorder %s574_s16, %s833_s17  ;;  %p838_p11 = scmp.lt.s32.totalorder %s574_s16, %s574_s16 }
  0x64   :  { %v508_v13 = vmul.f32 2.0, %v1021_v33  ;;  %v482_v15 = vmul.f32 %v973_v22, %v973_v22  ;;  %v473_v23 = vmul.f32 %v967_v19, %v967_v19  ;;  %v507_v27 = vmul.f32 2.0, %v1023_v34  ;;  %p839_p12 = scmp.lt.s32.totalorder %s837_s18, %s833_s17 }
  0x65   :  { %v1101_v28 = vmul.f32 2.0, %v494_v5  ;;  %v481_v29 = vmul.f32 %v971_v21, %v971_v21  ;;  %v509_v33 = vmul.f32 2.0, %v491_v16  ;;  %v497_v32 = vadd.f32 %v496_v12, %v495_v9 }
  0x66   :  { %v1106_v37 = vmul.f32 2.0, %v500_v8  ;;  %v504_v19 = vsel %vm168_vm0, %v474_v17, 0.0  ;;  %v505_v41 = vsel %vm168_vm0, %v482_v15, 0.0  ;;  %v501_v21 = vsel %vm168_vm0, %v473_v23, 0.0  ;;  %p840_p13 = por %p839_p12, %p838_p11 }
  0x67   :  { %v502_v48 = vsel %vm168_vm0, %v481_v29, 0.0  ;;  %v511_v52 = vmul.f32 2.0, %v497_v32  ;;  %v506_v55 = vadd.f32 %v505_v41, %v504_v19  ;;  %vm545_vm7 = vcmask 516096  }
  0x68   :  { %v503_v59 = vadd.f32 %v502_v48, %v501_v21  ;;  %p841_p0 = pnand %p840_p13, %p834_p10 }
  0x69   :  { %v514_v17 = vmul.f32 2.0, %v506_v55 }
 0x10a   :  { %v674_v18 = vpop.f32.mrb[0].mxu0 }
 0x10b   :  { %v428_v24 = vmul.f32 %v674_v18, %v674_v18  ;;  %v702_v25 = vpop.f32.mrb[0].mxu1  ;;  %v259_v26 = vpop.f32.mrb[1].mxu0 }
 0x10c   :  { %v436_v20 = vmul.f32 %v702_v25, %v702_v25  ;;  %v427_v30 = vmul.f32 %v259_v26, %v259_v26  ;;  %v388_v31 = vpop.f32.mrb[1].mxu1  ;;  %v513_v25 = vmul.f32 2.0, %v503_v59 }
 0x10d   :  { %v446_v22 = vsel %vm168_vm0, %v428_v24, 0.0  ;;  %v435_v36 = vmul.f32 %v388_v31, %v388_v31 }
 0x10e   :  { %v447_v39 = vsel %vm168_vm0, %v436_v20, 0.0  ;;  %v443_v34 = vsel %vm168_vm0, %v427_v30, 0.0  ;;  %v677_v40 = vpop.f32.mrb[2].mxu0 }
 0x10f   :  { %v448_v43 = vadd.f32 %v447_v39, %v446_v22  ;;  %v444_v44 = vsel %vm168_vm0, %v435_v36, 0.0  ;;  %v430_v45 = vmul.f32 %v677_v40, %v677_v40  ;;  %v705_v46 = vpop.f32.mrb[2].mxu1  ;;  %v269_v47 = vpop.f32.mrb[3].mxu0 }
 0x110   :  { %v445_v38 = vadd.f32 %v444_v44, %v443_v34  ;;  %v438_v42 = vmul.f32 %v705_v46, %v705_v46  ;;  %v429_v49 = vmul.f32 %v269_v47, %v269_v47  ;;  %v398_v50 = vpop.f32.mrb[3].mxu1 }
 0x111   :  { %v516_v35 = vsub.f32 %v448_v43, %v508_v13  ;;  %v452_v53 = vsel %vm168_vm0, %v430_v45, 0.0  ;;  %v437_v54 = vmul.f32 %v398_v50, %v398_v50 }
 0x112   :  { %v515_v56 = vsub.f32 %v445_v38, %v507_v27  ;;  %v453_v57 = vsel %vm168_vm0, %v438_v42, 0.0  ;;  %v449_v51 = vsel %vm168_vm0, %v429_v49, 0.0  ;;  %v680_v58 = vpop.f32.mrb[4].mxu0 }
 0x113   :  { %v524_v60 = vsel %vm168_vm0, %v516_v35, 0.0  ;;  %v454_v61 = vadd.f32 %v453_v57, %v452_v53  ;;  %v450_v62 = vsel %vm168_vm0, %v437_v54, 0.0  ;;  %v432_v63 = vmul.f32 %v680_v58, %v680_v58  ;;  %v708_v0 = vpop.f32.mrb[4].mxu1  ;;  %v279_v1 = vpop.f32.mrb[5].mxu0 }
 0x114   :  { %v523_v2 = vsel %vm168_vm0, %v515_v56, 0.0  ;;  %v451_v3 = vadd.f32 %v450_v62, %v449_v51  ;;  %v440_v7 = vmul.f32 %v708_v0, %v708_v0  ;;  %v431_v11 = vmul.f32 %v279_v1, %v279_v1  ;;  %v408_v6 = vpop.f32.mrb[5].mxu1 }
 0x115   :  { %v525_v10 = vadd.f32 %v524_v60, %v523_v2  ;;  %v518_v4 = vsub.f32 %v454_v61, %v1101_v28  ;;  %v458_v14 = vsel %vm168_vm0, %v432_v63, 0.0  ;;  %v439_v5 = vmul.f32 %v408_v6, %v408_v6 }
 0x116   :  { %v517_v16 = vsub.f32 %v451_v3, %v509_v33  ;;  %v459_v8 = vsel %vm168_vm0, %v440_v7, 0.0  ;;  %v455_v9 = vsel %vm168_vm0, %v431_v11, 0.0  ;;  %v683_v12 = vpop.f32.mrb[6].mxu0 }
 0x117   :  { %v460_v18 = vadd.f32 %v459_v8, %v458_v14  ;;  %v456_v13 = vsel %vm168_vm0, %v439_v5, 0.0  ;;  %v434_v15 = vmul.f32 %v683_v12, %v683_v12  ;;  %v711_v23 = vpop.f32.mrb[6].mxu1  ;;  %v289_v24 = vpop.f32.mrb[7].mxu0  ;;  %v528_v30 = vsel %vm168_vm0, %v518_v4, 0.0 }
 0x118   :  { %v526_v26 = vsel %vm168_vm0, %v517_v16, 0.0  ;;  %v457_v27 = vadd.f32 %v456_v13, %v455_v9  ;;  %v442_v28 = vmul.f32 %v711_v23, %v711_v23  ;;  %v433_v29 = vmul.f32 %v289_v24, %v289_v24  ;;  %v418_v20 = vpop.f32.mrb[7].mxu1 }
 0x119   :  { %v527_v31 = vadd.f32 %v526_v26, %v525_v10  ;;  %v464_v33 = vsel %vm168_vm0, %v434_v15, 0.0  ;;  %v441_v32 = vmul.f32 %v418_v20, %v418_v20  ;;  %v520_v22 = vsub.f32 %v460_v18, %v1106_v37 }
 0x11a   :  { %v519_v36 = vsub.f32 %v457_v27, %v511_v52  ;;  %v465_v19 = vsel %vm168_vm0, %v442_v28, 0.0  ;;  %v461_v39 = vsel %vm168_vm0, %v433_v29, 0.0 }
 0x11b   :  { %v529_v34 = vadd.f32 %v528_v30, %v527_v31  ;;  %v466_v40 = vadd.f32 %v465_v19, %v464_v33  ;;  %v462_v41 = vsel %vm168_vm0, %v441_v32, 0.0  ;;  %v532_v45 = vsel %vm168_vm0, %v520_v22, 0.0 }
 0x11c   :  { %v530_v21 = vsel %vm168_vm0, %v519_v36, 0.0  ;;  %v463_v43 = vadd.f32 %v462_v41, %v461_v39 }
 0x11d   :  { %v531_v44 = vadd.f32 %v530_v21, %v529_v34  ;;  %v522_v46 = vsub.f32 %v466_v40, %v514_v17 }
 0x11e   :  { %v521_v47 = vsub.f32 %v463_v43, %v513_v25 }
 0x11f   :  { %v533_v48 = vadd.f32 %v532_v45, %v531_v44  ;;  %v536_v42 = vsel %vm168_vm0, %v522_v46, 0.0 }
 0x120   :  { %v534_v37 = vsel %vm168_vm0, %v521_v47, 0.0 }
 0x121   :  { %v535_v38 = vadd.f32 %v534_v37, %v533_v48 }
 0x123   :  { %v537_v49 = vadd.f32 %v536_v42, %v535_v38 }
 0x125   :  { %v538_v50 = vrot.slane %v537_v49, 4 }
 0x127   :  { %v539_v52 = vadd.f32 %v538_v50, %v537_v49 }
 0x129   :  { %v540_v35 = vrot.slane %v539_v52, 2 }
 0x12b   :  { %v541_v53 = vadd.f32 %v540_v35, %v539_v52 }
 0x12d   :  { %v542_v54 = vrot.slane %v541_v53, 1 }
 0x12f   :  { %v543_v55 = vadd.f32 %v542_v54, %v541_v53 }
 0x131   :  { %546 = vst.msk [vmem:[#allocation8] sm:$0x1] %vm545_vm7, %v543_v55 }
 0x132   :  { %844 = shalt.err (!%p841_p0)
}
 0x133   :  { %s845_s19 = scalar_lea.hbm %s1155_s6, 16 }
 0x134   :  { %p846_p1 = scmp.ne.s32.totalorder %s1155_s6, %s845_s19  ;;  %p849_p2 = scmp.lt.u32.totalorder %s845_s19, %s1155_s6 }
 0x136   :  { %p851_p3 = pnand %p849_p2, %p846_p1 }
 0x138   :  { %854 = shalt.err (!%p851_p3)
}
 0x139   :  { %576 = dma.vmem_to_hbm [thread:$0]  %s574_s16, 16, %s1155_s6, [#allocation7]  }
 0x13a   :  { %857 = dma.done.wait [#allocation4], 16  }
 0x13b   :  { %858 = vsyncadd [#allocation4], 4294967280 }
 0x13c   :  { %859 = dma.done.wait [#allocation7], 32  }
 0x13d   :  { %860 = vsyncadd [#allocation7], 4294967264 }
 0x13e   :  { %586 = vsyncpa [#allocation3], 1 }
 0x13f   :  { %587 = vsyncpa [#allocation4], 1 }
 0x140   :  { %588 = vsyncpa [#allocation7], 1 }

</bundles_post_ra>
